<compile_context>
chip_gen: v6e
topology: v6e:2x2x1
jax: 0.10.0
libtpu: 0.0.40
codegen_flags: <defaults>
</compile_context>

<pallas_src>
import jax
import jax.numpy as jnp
import numpy as np
from jax import lax
from jax.experimental import pallas as pl
from jax.experimental.pallas import tpu as pltpu


_SINGLE_PASS_BUDGET = 24 << 20   # per-block working-set target (bytes), single-pass path
_TWO_PASS_BUDGET = 8 << 20       # per-block working-set target (bytes), streaming path


def _vmem_limit(work_bytes):
    """Explicit scoped-VMEM limit: working set + headroom, floored/capped portably."""
    return int(min(max(work_bytes + (4 << 20), 16 << 20), 48 << 20))


# ---------------------------------------------------------------------------
# Single-pass kernel: one (full-sequence, feature-tile) block per grid step.
# ---------------------------------------------------------------------------
def _single_pass_kernel(inv_ref, x_ref, nm_ref, o_ref):
    x = x_ref[...].astype(jnp.float32)        # (N, TILE_D)
    nm = nm_ref[...].astype(jnp.float32)      # (N, 1): 1.0 where the position is valid (= ~mask)
    inv_valid = inv_ref[pl.program_id(0)]     # scalar f32 from SMEM, precomputed per batch

    # masked mean over the sequence, per feature
    mean = jnp.sum(x * nm, axis=0, keepdims=True) * inv_valid      # (1, TILE_D)
    xc = x - mean                                                   # centering hits ALL rows (torch)

    # torch: sqrt( where(xc.sum(dim=1)==0, 1, xc**2).sum(dim=1) / valid )
    # fused: when s==0 every element of the where() is 1, so its sum is exactly N.
    n_rows = jnp.float32(x_ref.shape[0])
    s = jnp.sum(xc, axis=0, keepdims=True)                          # (1, TILE_D)
    sumsq = jnp.sum(xc * xc, axis=0, keepdims=True)                 # (1, TILE_D)
    sumsq = jnp.where(s == 0.0, n_rows, sumsq)

    rstd = lax.rsqrt(sumsq * inv_valid)                             # EUP, (1, TILE_D)
    o_ref[...] = (xc * rstd).astype(o_ref.dtype)


# ---------------------------------------------------------------------------
# Two-pass (streaming) fallback kernels for long sequences.
# ---------------------------------------------------------------------------
def _stats_kernel(x_ref, nm_ref, sxm_ref, sx_ref, sxx_ref):
    @pl.when(pl.program_id(2) == 0)
    def _():
        sxm_ref[...] = jnp.zeros_like(sxm_ref)
        sx_ref[...] = jnp.zeros_like(sx_ref)
        sxx_ref[...] = jnp.zeros_like(sxx_ref)

    x = x_ref[...].astype(jnp.float32)        # (TILE_N, TILE_D)
    nm = nm_ref[...].astype(jnp.float32)      # (TILE_N, 1)
    sxm_ref[...] += jnp.sum(x * nm, axis=0, keepdims=True)
    sx_ref[...] += jnp.sum(x, axis=0, keepdims=True)
    sxx_ref[...] += jnp.sum(x * x, axis=0, keepdims=True)


def _normalize_kernel(x_ref, mean_ref, rstd_ref, o_ref):
    x = x_ref[...].astype(jnp.float32)
    o_ref[...] = ((x - mean_ref[...]) * rstd_ref[...]).astype(o_ref.dtype)


# ---------------------------------------------------------------------------
# Tiling helpers (budget the *f32* working set, not just the input itemsize).
# ---------------------------------------------------------------------------
def _choose_tile_d(N, D, in_isz, out_isz, budget_bytes):
    """Largest feature tile whose full-sequence working set fits the budget.

    Working set per (N, tile) block: double-buffered input + double-buffered
    output + ~2 live f32 temporaries (x_f32, xc).  Returns None if even the
    smallest legal tile does not fit -> use the two-pass streaming path.
    """
    bytes_per_col = N * (2 * in_isz + 2 * out_isz + 2 * 4)
    if D % 128 != 0:
        return D if D * bytes_per_col <= budget_bytes else None
    for cand in (2048, 1024, 512, 256, 128):
        if D % cand == 0 and cand * bytes_per_col <= budget_bytes:
            return cand
    return None


def _choose_two_pass_tiles(N, D, in_isz, out_isz, budget_bytes):
    if D % 128 != 0:
        tile_d = D
    elif D % 512 == 0:
        tile_d = 512
    elif D % 256 == 0:
        tile_d = 256
    else:
        tile_d = 128
    bytes_per_row = tile_d * (2 * in_isz + 2 * out_isz + 3 * 4)
    tile_n = N
    for cand in (8, 16, 32, 64, 128, 256, 512, 1024, 2048, 4096):
        if cand <= N and N % cand == 0 and cand * bytes_per_row <= budget_bytes:
            tile_n = cand
    return tile_n, tile_d


# ---------------------------------------------------------------------------
# pallas_call wrappers
# ---------------------------------------------------------------------------
def _single_pass(x, nm, inv_valid, tile_d, in_isz, out_isz):
    B, N, D = x.shape
    work = N * tile_d * (2 * in_isz + 2 * out_isz + 2 * 4) + 2 * N * 4
    return pl.pallas_call(
        _single_pass_kernel,
        out_shape=jax.ShapeDtypeStruct((B, N, D), x.dtype),
        grid_spec=pltpu.PrefetchScalarGridSpec(
            num_scalar_prefetch=1,                                     # inv_valid -> SMEM
            grid=(B, D // tile_d),
            in_specs=[
                pl.BlockSpec((None, N, tile_d), lambda b, d, inv: (b, 0, d)),   # x
                pl.BlockSpec((None, N, 1), lambda b, d, inv: (b, 0, 0)),        # ~mask, constant in d
            ],
            out_specs=pl.BlockSpec((None, N, tile_d), lambda b, d, inv: (b, 0, d)),
        ),
        compiler_params=pltpu.CompilerParams(
            dimension_semantics=("parallel", "parallel"),
            vmem_limit_bytes=_vmem_limit(work)),
    )(inv_valid, x, nm)


def _two_pass(x, nm, inv_valid, in_isz, out_isz):
    B, N, D = x.shape
    tile_n, tile_d = _choose_two_pass_tiles(N, D, in_isz, out_isz, _TWO_PASS_BUDGET)

    stats_shape = jax.ShapeDtypeStruct((B, 1, D), jnp.float32)
    work_stats = tile_n * tile_d * (2 * in_isz + 2 * 4) + 3 * tile_d * 4 + 2 * tile_n * 4
    sxm, sx, sxx = pl.pallas_call(
        _stats_kernel,
        out_shape=(stats_shape, stats_shape, stats_shape),
        grid_spec=pltpu.PrefetchScalarGridSpec(
            num_scalar_prefetch=0,
            grid=(B, D // tile_d, N // tile_n),                        # reduction axis last
            in_specs=[
                pl.BlockSpec((None, tile_n, tile_d), lambda b, d, n: (b, n, d)),
                pl.BlockSpec((None, tile_n, 1), lambda b, d, n: (b, n, 0)),
            ],
            out_specs=[
                pl.BlockSpec((None, 1, tile_d), lambda b, d, n: (b, 0, d)),
                pl.BlockSpec((None, 1, tile_d), lambda b, d, n: (b, 0, d)),
                pl.BlockSpec((None, 1, tile_d), lambda b, d, n: (b, 0, d)),
            ],
        ),
        compiler_params=pltpu.CompilerParams(
            dimension_semantics=("parallel", "parallel", "arbitrary"),
            vmem_limit_bytes=_vmem_limit(work_stats)),
    )(x, nm)

    inv_b = inv_valid.reshape(B, 1, 1)
    n_f = jnp.float32(N)
    mean = sxm * inv_b
    s = sx - n_f * mean                                   # = sum(x - mean) over all rows
    sumsq = sxx - 2.0 * mean * sx + n_f * mean * mean     # = sum((x - mean)^2), unmasked (torch)
    sumsq = jnp.where(s == 0.0, n_f, sumsq)
    rstd = lax.rsqrt(sumsq * inv_b)

    work_norm = tile_n * tile_d * (2 * in_isz + 2 * out_isz + 2 * 4) + 4 * tile_d * 4
    return pl.pallas_call(
        _normalize_kernel,
        out_shape=jax.ShapeDtypeStruct((B, N, D), x.dtype),
        grid_spec=pltpu.PrefetchScalarGridSpec(
            num_scalar_prefetch=0,
            grid=(B, N // tile_n, D // tile_d),
            in_specs=[
                pl.BlockSpec((None, tile_n, tile_d), lambda b, n, d: (b, n, d)),
                pl.BlockSpec((None, 1, tile_d), lambda b, n, d: (b, 0, d)),
                pl.BlockSpec((None, 1, tile_d), lambda b, n, d: (b, 0, d)),
            ],
            out_specs=pl.BlockSpec((None, tile_n, tile_d), lambda b, n, d: (b, n, d)),
        ),
        compiler_params=pltpu.CompilerParams(
            dimension_semantics=("parallel", "parallel", "parallel"),
            vmem_limit_bytes=_vmem_limit(work_norm)),
    )(x, mean, rstd)


def cross_feature_norm(x, mask=None, *, force_two_pass=False):
    """Per-feature normalization across the sequence (mask-aware), matching the torch module.

    mask is (B, N) bool with True = padded/masked position.  mask=None mirrors the
    torch default all-True mask (valid count clamped to 1, mean over zero elements);
    it does NOT mean "no masking".
    """
    B, N, D = x.shape
    if mask is None:
        mask = jnp.ones((B, N), dtype=jnp.bool_)
    nm2d = jnp.logical_not(mask).astype(jnp.float32)                                   # (B, N)
    inv_valid = (1.0 / jnp.maximum(jnp.sum(nm2d, axis=1), 1.0)).astype(jnp.float32)    # (B,)
    nm = nm2d.reshape(B, N, 1)

    in_isz = jnp.dtype(x.dtype).itemsize
    out_isz = in_isz

    tile_d = None if force_two_pass else _choose_tile_d(N, D, in_isz, out_isz, _SINGLE_PASS_BUDGET)
    if tile_d is not None:
        # v7x megacore occupancy: make sure there are >= 2 blocks for the 2 TensorCores.
        if B * (D // tile_d) < 2 and D % 128 == 0 and tile_d >= 256:
            tile_d //= 2
        return _single_pass(x, nm, inv_valid, tile_d, in_isz, out_isz)
    return _two_pass(x, nm, inv_valid, in_isz, out_isz)


def _reference(x, mask):
    """Pure-JAX transcription of the PyTorch forward."""
    nm = jnp.logical_not(mask).astype(jnp.float32)
    valid = jnp.maximum(jnp.sum(nm, axis=1, keepdims=True), 1.0)[:, :, None]
    mean = jnp.sum(x * nm[:, :, None], axis=1, keepdims=True) / valid
    xc = x - mean
    s = jnp.sum(xc, axis=1, keepdims=True)
    sq = jnp.where(s == 0.0, 1.0, xc * xc)
    std = jnp.sqrt(jnp.sum(sq, axis=1, keepdims=True) / valid)
    return xc / std


if __name__ == "__main__":
    key = jax.random.PRNGKey(0)
    k0, k1 = jax.random.split(key)

    # --- small f32 case (single-pass path) -----------------------------------
    B, N, D = 2, 8, 32
    x = jax.random.normal(k0, (B, N, D), jnp.float32)
    lengths = jnp.array([6, 4], dtype=jnp.int32)
    mask = jnp.arange(N)[None, :] >= lengths[:, None]     # (B, N) bool, True = padded

    y = jax.block_until_ready(cross_feature_norm(x, mask))
    ref = _reference(x, mask)
    np.testing.assert_allclose(np.asarray(y), np.asarray(ref), rtol=1e-5, atol=1e-5)

    # torch-default all-True mask (valid clamped to 1)
    y0 = jax.block_until_ready(cross_feature_norm(x))
    ref0 = _reference(x, jnp.ones((B, N), dtype=jnp.bool_))
    np.testing.assert_allclose(np.asarray(y0), np.asarray(ref0), rtol=1e-5, atol=1e-5)

    # force the long-sequence streaming (two-pass) path at small shapes
    y2 = jax.block_until_ready(cross_feature_norm(x, mask, force_two_pass=True))
    np.testing.assert_allclose(np.asarray(y2), np.asarray(ref), rtol=1e-4, atol=1e-4)

    # bf16 input with a lane-aligned (128-multiple) feature tile
    B2, N2, D2 = 2, 64, 256
    xb = jax.random.normal(k1, (B2, N2, D2), jnp.float32)
    lengths2 = jnp.array([50, 17], dtype=jnp.int32)
    mask2 = jnp.arange(N2)[None, :] >= lengths2[:, None]
    xb16 = xb.astype(jnp.bfloat16)
    yb = jax.block_until_ready(cross_feature_norm(xb16, mask2))
    refb = _reference(xb16.astype(jnp.float32), mask2).astype(jnp.bfloat16)
    np.testing.assert_allclose(np.asarray(yb.astype(jnp.float32)),
                               np.asarray(refb.astype(jnp.float32)),
                               rtol=5e-2, atol=5e-2)

    print("KERNEL_OK")
</pallas_src>

<mosaic_0001>
module attributes {stable_mosaic.version = 11 : i64} {
  func.func @_single_pass_kernel(%arg0: i32, %arg1: i32, %arg2: memref<2xf32, #tpu.memory_space<smem>>, %arg3: memref<1x8x32xf32, #tpu.memory_space<vmem>>, %arg4: memref<1x8x1xf32, #tpu.memory_space<vmem>>, %arg5: memref<1x8x32xf32, #tpu.memory_space<vmem>>) attributes {dimension_semantics = [#tpu.dimension_semantics<parallel>, #tpu.dimension_semantics<parallel>], iteration_bounds = array<i64: 2, 1>, scalar_prefetch = 1 : i64, scratch_operands = 0 : i64, tpu.core_type = #tpu.core_type<tc>, window_params = [{transform_indices = @transform_0, window_bounds = array<i64: 1, 8, 32>}, {transform_indices = @transform_1, window_bounds = array<i64: 1, 8, 1>}, {transform_indices = @transform_2, window_bounds = array<i64: 1, 8, 32>}]} {
    %c0 = arith.constant 0 : index
    %c0_0 = arith.constant 0 : index
    %c0_1 = arith.constant 0 : index
    %0 = vector.load %arg3[%c0, %c0_0, %c0_1] : memref<1x8x32xf32, #tpu.memory_space<vmem>>, vector<1x8x32xf32>
    %1 = vector.shape_cast %0 : vector<1x8x32xf32> to vector<8x32xf32>
    %c0_2 = arith.constant 0 : index
    %c0_3 = arith.constant 0 : index
    %c0_4 = arith.constant 0 : index
    %2 = vector.load %arg4[%c0_2, %c0_3, %c0_4] : memref<1x8x1xf32, #tpu.memory_space<vmem>>, vector<1x8x1xf32>
    %3 = vector.shape_cast %2 : vector<1x8x1xf32> to vector<8x1xf32>
    %4 = arith.index_cast %arg0 : i32 to index
    %5 = memref.load %arg2[%4] : memref<2xf32, #tpu.memory_space<smem>>
    %6 = vector.broadcast %3 : vector<8x1xf32> to vector<8x32xf32>
    %7 = arith.mulf %1, %6 : vector<8x32xf32>
    %cst = arith.constant dense<0.000000e+00> : vector<32xf32>
    %8 = vector.multi_reduction <add>, %7, %cst [0] : vector<8x32xf32> to vector<32xf32>
    %9 = vector.shape_cast %8 : vector<32xf32> to vector<1x32xf32>
    %10 = vector.broadcast %5 : f32 to vector<1x32xf32>
    %11 = arith.mulf %9, %10 : vector<1x32xf32>
    %12 = vector.broadcast %11 : vector<1x32xf32> to vector<8x32xf32>
    %13 = arith.subf %1, %12 : vector<8x32xf32>
    %cst_5 = arith.constant dense<0.000000e+00> : vector<32xf32>
    %14 = vector.multi_reduction <add>, %13, %cst_5 [0] : vector<8x32xf32> to vector<32xf32>
    %15 = vector.shape_cast %14 : vector<32xf32> to vector<1x32xf32>
    %16 = arith.mulf %13, %13 : vector<8x32xf32>
    %cst_6 = arith.constant dense<0.000000e+00> : vector<32xf32>
    %17 = vector.multi_reduction <add>, %16, %cst_6 [0] : vector<8x32xf32> to vector<32xf32>
    %18 = vector.shape_cast %17 : vector<32xf32> to vector<1x32xf32>
    %cst_7 = arith.constant 0.000000e+00 : f32
    %19 = vector.broadcast %cst_7 : f32 to vector<1x32xf32>
    %20 = arith.cmpf oeq, %15, %19 : vector<1x32xf32>
    %cst_8 = arith.constant 8.000000e+00 : f32
    %21 = vector.broadcast %cst_8 : f32 to vector<1x32xf32>
    %22 = arith.select %20, %21, %18 : vector<1x32xi1>, vector<1x32xf32>
    %23 = vector.broadcast %5 : f32 to vector<1x32xf32>
    %24 = arith.mulf %22, %23 : vector<1x32xf32>
    %25 = math.rsqrt %24 : vector<1x32xf32>
    %26 = vector.broadcast %25 : vector<1x32xf32> to vector<8x32xf32>
    %27 = arith.mulf %13, %26 : vector<8x32xf32>
    %c0_9 = arith.constant 0 : index
    %c0_10 = arith.constant 0 : index
    %c0_11 = arith.constant 0 : index
    %28 = vector.load %arg5[%c0_9, %c0_10, %c0_11] : memref<1x8x32xf32, #tpu.memory_space<vmem>>, vector<1x8x32xf32>
    %29 = vector.shape_cast %28 : vector<1x8x32xf32> to vector<8x32xf32>
    %30 = vector.shape_cast %27 : vector<8x32xf32> to vector<1x8x32xf32>
    tpu.vector_store %arg5[%c0_9, %c0_10, %c0_11], %30 {strides = array<i32>} : memref<1x8x32xf32, #tpu.memory_space<vmem>>, vector<1x8x32xf32>,
    return
  }
  func.func @transform_0(%arg0: i32, %arg1: i32, %arg2: memref<2xf32, #tpu.memory_space<smem>>) -> (i32, i32, i32) {
    %c0_i32 = arith.constant 0 : i32
    %c0_i32_0 = arith.constant 0 : i32
    return %arg0, %c0_i32, %arg1 : i32, i32, i32
  }
  func.func @transform_1(%arg0: i32, %arg1: i32, %arg2: memref<2xf32, #tpu.memory_space<smem>>) -> (i32, i32, i32) {
    %c0_i32 = arith.constant 0 : i32
    %c0_i32_0 = arith.constant 0 : i32
    %c0_i32_1 = arith.constant 0 : i32
    return %arg0, %c0_i32, %c0_i32_0 : i32, i32, i32
  }
  func.func @transform_2(%arg0: i32, %arg1: i32, %arg2: memref<2xf32, #tpu.memory_space<smem>>) -> (i32, i32, i32) {
    %c0_i32 = arith.constant 0 : i32
    %c0_i32_0 = arith.constant 0 : i32
    return %arg0, %c0_i32, %arg1 : i32, i32, i32
  }
}

</mosaic_0001>

<bundles_post_ra>
// kernel: tpu_custom_call.1
= control target key start
LH: loop header
LB: loop body
LE: loop exit
PB: predicated region body
PF: predicated region fallthrough
CT: control target
= control target key end

     0   :  { %s624_s0 = inlined_call_operand.vmem [shape: f32[2], index: 0, kind: input, shape index: {}]   ;;  %s625_s1 = inlined_call_operand.vmem [shape: f32[2,8,32], index: 1, kind: input, shape index: {}]   ;;  %s626_s2 = inlined_call_operand.vmem [shape: f32[2,8,1], index: 2, kind: input, shape index: {}]   ;;  %s627_s3 = inlined_call_operand.hbm [shape: f32[2,8,32], index: 3, kind: output, shape index: {}]  }
   0x1   :  { %s8_s14 = sshll.u32 %s624_s0, 4  ;;  %s9_s14 = int_to_ptr.vmem [resolvable:$true] %s8_s14 }
   0x2   :  { %s399_s15 = scalar_lea.vmem %s9_s14, 16  ;;  %p404_p1 = scmp.lt.s32.totalorder %s9_s14, %s9_s14 }
   0x3   :  { %p400_p0 = scmp.ne.s32.totalorder %s9_s14, %s399_s15  ;;  %p405_p2 = scmp.lt.s32.totalorder %s399_s15, %s399_s15 }
   0x5   :  { %p406_p3 = por %p405_p2, %p404_p1 }
   0x7   :  { %p407_p4 = pnand %p406_p3, %p400_p0 }
   0x9   :  { %410 = shalt.err (!%p407_p4)  }
   0xa   :  { %s491_s16 = smov [#allocation3]  }
   0xb   :  { %11 = dma.vmem_to_smem %s9_s14, 16, %s491_s16, [#allocation2] }
   0xc   :  { %461 = dma.done.wait [#allocation2], 16 }
   0xd   :  { %462 = vsyncadd [#allocation2], 4294967280 }
   0xe   :  { %13 = sfence }
   0xf   :  { %14 = vsyncpa [#allocation5], 0 }
  0x10   :  { %16 = vsyncpa [#allocation5 + $0x1], 0  ;;  %s517_s17 = smov 0   ;;  %s519_s18 = smov 0  }
  0x11   :  { %s521_s0 = smov 0   ;;  %s523_s19 = smov 0  }
  0x12   :  { %s525_s20 = smov 0   ;;  %s527_s21 = smov 0  }
  0x13 LB: > { %s327_s22 = sadd.s32 4294967295, %s489_s21   ;;  %s328_s23 = sadd.s32 4294967294, %s489_s21   ;;  %s489_s21 = sphi %s527_s21, %s22_s21   ;;  %s485_s20 = sphi %s525_s20, %s634_s20   ;;  %s481_s19 = sphi %s523_s19, %s633_s19   ;;  %s477_s0 = sphi %s521_s0, %s632_s0   ;;  %s473_s18 = sphi %s519_s18, %s631_s18   ;;  %s469_s17 = sphi %s517_s17, %s630_s17  }
  0x14   : > { %s34_s24 = sadd.s32 1, %s485_s20  ;;  %s97_s25 = sadd.s32 1, %s477_s0 }
  0x15   : > { %p36_p5 = scmp.ge.s32.totalorder %s34_s24, 2  ;;  %p107_p6 = scmp.ne.s32.totalorder %s477_s0, %s473_s18 }
  0x16   : > { %p108_p7 = scmp.eq.s32.totalorder %s327_s22, 1  ;;  %p113_p8 = scmp.ne.s32.totalorder %s473_s18, %s469_s17 }
  0x17   : > { %s636_s24 = smov (%p36_p5, %s34_s24), 0  ;;  %p114_p10 = scmp.eq.s32.totalorder %s328_s23, 1 }
  0x18   : > { %p557_p9 = por %p108_p7, %p107_p6  ;;  %s92_s27 = ssub.s32 %s485_s20, %s636_s24 }
  0x19   : > { %p331_p11 = scmp.ge.s32.totalorder %s489_s21, 1  ;;  %p95_p12 = scmp.eq.s32.totalorder %s92_s27, 0 }
  0x1a   : > { %p564_p13 = por %p114_p10, %p113_p8  ;;  %p149_p0 = scmp.lt.s32.totalorder %s489_s21, 3 }
  0x1b   : > { %s570_s29 = scalar_select %p95_p12, %s477_s0, %s97_s25  }
  0x1c   : > { %p150_p1 = pnand %p331_p11, %p149_p0 }
  0x1d   : > { %p177_p2 = scmp.lt.s32.totalorder (!%p150_p1), %s481_s19, 1  ;;  %s190_s11 = sld [smem:[#allocation3 + %s481_s19]] (!%p150_p1) }
  0x1e   : > { %153 = sbr.rel (%p150_p1) target bundleno = 230 (0xe6), region = 28  ;;  %s174_s12 = sand.u32 (!%p150_p1), 1, %s473_s18  }
  0x1f   : > { %s332_s13 = sshll.u32 (!%p150_p1), %s174_s12, 3  ;;  %s336_s14 = sshll.u32 (!%p150_p1), %s481_s19, 7 }
  0x20   : > { %s176_s15 = scalar_lea.vmem (!%p150_p1), [#allocation4], %s332_s13  ;;  %s242_s25 = scalar_lea.hbm (!%p150_p1), %s627_s3, %s336_s14 }
  0x21   : > { %s244_s16 = sshll.u32 (!%p150_p1), %s176_s15, 4  ;;  %s230_s27 = scalar_lea.sflag (!%p150_p1), [#allocation5], %s174_s12  ;;  %s245_s16 = int_to_ptr.vmem [resolvable:$true] %s244_s16 }
  0x23   : > { %v492_v0 = vmov 0   ;;  %s178_s30 = scalar_select %p177_p2, %s481_s19, 1  ;;  %vm197_vm0 = vcmask 261120   ;;  %v205_v11 = vstv %s190_s11 }
  0x24   : > { %396 = vset.pattern.permute.xlu0 %v492_v0 }
  0x25   : > { %s333_s4 = sshll.u32 %s178_s30, 3  ;;  %s411_s30 = scalar_lea.vmem %s245_s16, 128 }
  0x26   : > { %s187_s7 = scalar_lea.vmem %s626_s2, %s333_s4  ;;  %s183_s10 = scalar_lea.vmem %s625_s1, %s333_s4 }
  0x27   : > { %v189_v1 = vld [vmem:[%s187_s7] sm:$0xff]  ;;  %p412_p3 = scmp.ne.s32.totalorder %s245_s16, %s411_s30  ;;  %s493_s4 = smov [#allocation4]  }
  0x28   : > { %193 = vperm.xlu0 %396, %v189_v1   ;;  %v188_v2 = vld [vmem:[%s183_s10] sm:$0xff]  ;;  %s415_s5 = sshll.u32 %s493_s4, 4  ;;  %s416_s5 = int_to_ptr.vmem [resolvable:$false] %s415_s5 }
  0x29   : > { %p413_p4 = pnand %p412_p3, %p557_p9  ;;  %s417_s19 = scalar_lea.vmem %s416_s5, 256 }
  0x2a   : > { %p418_p6 = scmp.lt.s32.totalorder %s245_s16, %s416_s5  ;;  %p419_p7 = scmp.lt.s32.totalorder %s417_s19, %s411_s30 }
  0x2b   : > { %p414_p5 = pneg %p413_p4 }
  0x2c   : > { %p420_p8 = por %p419_p7, %p418_p6 }
  0x2e   : > { %p421_p10 = pnand %p420_p8, %p414_p5 }
  0xa3   : > { %v194_v3 = vpop.permute.xlu0 %193 }
  0xa4   : > { %v196_v4 = vmul.f32 %v194_v3, %v188_v2 }
  0xa6   : > { %v198_v5 = vsel %vm197_vm0, %v196_v4, 0.0 }
  0xa7   : > { %v199_v6 = vrot.slane %v198_v5, 4 }
  0xa9   : > { %v200_v7 = vadd.f32 %v199_v6, %v198_v5 }
  0xab   : > { %v201_v8 = vrot.slane %v200_v7, 2 }
  0xad   : > { %v202_v9 = vadd.f32 %v201_v8, %v200_v7 }
  0xaf   : > { %v203_v10 = vrot.slane %v202_v9, 1 }
  0xb1   : > { %v204_v12 = vadd.f32 %v203_v10, %v202_v9 }
  0xb3   : > { %v206_v13 = vmul.f32 %v205_v11, %v204_v12 }
  0xb5   : > { %v207_v14 = vsub.f32 %v188_v2, %v206_v13 }
  0xb7   : > { %v208_v15 = vsel %vm197_vm0, %v207_v14, 0.0  ;;  %v215_v16 = vmul.f32 %v207_v14, %v207_v14 }
  0xb8   : > { %v209_v17 = vrot.slane %v208_v15, 4 }
  0xb9   : > { %v216_v18 = vsel %vm197_vm0, %v215_v16, 0.0 }
  0xba   : > { %v210_v19 = vadd.f32 %v209_v17, %v208_v15  ;;  %v217_v20 = vrot.slane %v216_v18, 4 }
  0xbc   : > { %v211_v21 = vrot.slane %v210_v19, 2  ;;  %v218_v22 = vadd.f32 %v217_v20, %v216_v18 }
  0xbe   : > { %v212_v23 = vadd.f32 %v211_v21, %v210_v19  ;;  %v219_v24 = vrot.slane %v218_v22, 2 }
  0xc0   : > { %v213_v25 = vrot.slane %v212_v23, 1  ;;  %v220_v26 = vadd.f32 %v219_v24, %v218_v22 }
  0xc2   : > { %v214_v27 = vadd.f32 %v213_v25, %v212_v23  ;;  %v221_v28 = vrot.slane %v220_v26, 1 }
  0xc4   : > { %v222_v29 = vadd.f32 %v221_v28, %v220_v26  ;;  %vm223_vm1 = vcmp.eq.f32.partialorder %v214_v27, 0.0 }
  0xc6   : > { %v224_v30 = vsel %vm223_vm1, 8.0, %v222_v29 }
  0xc7   : > { %v225_v31 = vmul.f32 %v224_v30, %v205_v11 }
  0xc9   : > { %397 = vrsqrt.f32 %v225_v31 }
  0xd6   : > { %v398_v32 = vpop.eup %397 }
  0xd7   : > { %v227_v33 = vmul.f32 %v398_v32, %v207_v14 }
  0xd9   : > { %228 = vst.msk [vmem:[%s176_s15] sm:$0xff] %vm197_vm0, %v227_v33 }
  0xda   : > { %424 = shalt.err (!%p421_p10)
}
  0xdb   : > { %s425_s6 = scalar_lea.hbm %s242_s25, 128  ;;  %s429_s9 = scalar_lea.hbm %s627_s3, 256 }
  0xdc   : > { %p426_p11 = scmp.ne.s32.totalorder %s242_s25, %s425_s6  ;;  %p430_p1 = scmp.lt.s32.totalorder %s242_s25, %s627_s3 }
  0xdd   : > { %p431_p2 = scmp.lt.s32.totalorder %s429_s9, %s425_s6 }
  0xde   : > { %p427_p12 = pnand %p426_p11, %p557_p9 }
  0xdf   : > { %p432_p3 = por %p431_p2, %p430_p1 }
  0xe0   : > { %p428_p0 = pneg %p427_p12 }
  0xe2   : > { %p433_p4 = pnand %p432_p3, %p428_p0 }
  0xe4   : > { %436 = shalt.err (!%p433_p4)
}
  0xe5   : > { %339 = dma.vmem_to_hbm [thread:$0]  (%p557_p9), %s245_s16, 128, %s242_s25, %s230_s27  }
  0xe6 PF: > { %p345_p5 = scmp.ge.s32.totalorder %s489_s21, 2  ;;  %s256_s12 = sand.u32 1, %s469_s17  }
  0xe7   : > { %s257_s13 = scalar_lea.sflag [#allocation5], %s256_s12 }
  0xe8   : > { %p342_p6 = pnand %p345_p5, %p564_p13 }
  0xea   : > { %p343_p7 = pneg %p342_p6 }
  0xec   : > { %464 = dma.done.wait (%p343_p7), %s257_s13, 128  }
  0xed   : > { %466 = vsyncadd (%p343_p7), %s257_s13, 4294967168  ;;  %s22_s21 = sadd.s32 1, %s489_s21   ;;  %s630_s17 = smov %s473_s18 }
  0xee   : > { %p19_p8 = scmp.ge.s32.totalorder %s22_s21, 4   ;;  %s631_s18 = smov %s477_s0 }
  0xef   : > { %s632_s0 = smov %s570_s29  ;;  %s633_s19 = smov %s485_s20 }
  0xf0   : > { %s634_s20 = smov %s636_s24  ;;  %21 = sbr.rel (!%p19_p8) target bundleno = 19 (0x13), region = 66 }
  0xf5   :  { %262 = vsyncpa [#allocation5], 1 }
  0xf6   :  { %264 = vsyncpa [#allocation5 + $0x1], 1 }

</bundles_post_ra>
